<compile_context>
chip_gen: v6e
topology: v6e:2x2x1
jax: 0.10.0
libtpu: 0.0.40
codegen_flags: <defaults>
</compile_context>

<pallas_src>
import functools

import jax
import jax.numpy as jnp
import numpy as np
from jax.experimental import pallas as pl
from jax.experimental.pallas import tpu as pltpu

LN_EPS = 1e-5
_NEG = -1e9  # bias for padded softmax bins -> exp() == 0 after max-subtraction


def _round_up(x, m):
    return ((x + m - 1) // m) * m


def _vmem_capacity_bytes():
    try:
        info = pltpu.get_tpu_info()
        cap = getattr(info, "vmem_capacity_bytes", None)
        if cap:
            return int(cap)
    except Exception:
        pass
    return 64 << 20  # conservative default (v7x per-TensorCore VMEM)


# ----------------------------- kernels ------------------------------------- #

def _quality_kernel(x_ref, fmask_ref, gamma_ref, beta_ref,
                    w1_ref, b1_ref, w2_ref, b2_ref, cent_ref,
                    wlr_ref, blr_ref,
                    proj_ref, bins_ref, plddt_ref, *, d_true, nb_l):
    x = x_ref[0].astype(jnp.float32)                 # [TQ, DP]

    # Two-pass LayerNorm over the true feature dim (fmask zeroes padded lanes).
    inv_d = 1.0 / float(d_true)
    mu = jnp.sum(x, axis=-1, keepdims=True) * inv_d
    xc = (x - mu) * fmask_ref[...]
    var = jnp.sum(xc * xc, axis=-1, keepdims=True) * inv_d
    xn = xc * jax.lax.rsqrt(var + LN_EPS) * gamma_ref[...] + beta_ref[...]
    xn_bf = xn.astype(jnp.bfloat16)                  # bf16 MXU operand

    # Fused left/right projections for both pairwise heads: one [DP, 4*HP] matmul.
    proj = (jnp.dot(xn_bf, wlr_ref[...], preferred_element_type=jnp.float32)
            + blr_ref[...])
    proj_ref[0] = proj.astype(jnp.bfloat16)

    # pLDDT head: Linear -> ReLU -> Linear -> expected value over bins.
    h = jnp.maximum(
        jnp.dot(xn_bf, w1_ref[...], preferred_element_type=jnp.float32) + b1_ref[...],
        0.0)
    logits = (jnp.dot(h.astype(jnp.bfloat16), w2_ref[...],
                      preferred_element_type=jnp.float32) + b2_ref[...])
    bins_ref[0] = logits[:, :nb_l].astype(jnp.bfloat16)   # true bins only

    e = jnp.exp(logits - jnp.max(logits, axis=-1, keepdims=True))
    inv = pl.reciprocal(jnp.sum(e, axis=-1, keepdims=True), approx=True)
    plddt_ref[0] = jnp.sum(e * cent_ref[...], axis=-1, keepdims=True) * inv


def _pairwise_kernel(mrow_ref, mcol_ref, proj_i_ref, proj_j_ref,
                     two_ref, tbo_ref, tred_ref,
                     ewo_ref, ebo_ref, ered_ref,
                     dist_ref, ptm_rows_ref, eprob_ref, eerr_ref,
                     *, hp, nb_t):
    m_row = mrow_ref[0]                # [1, NP]
    m_i = mcol_ref[0]                  # [TI, 1]
    proj_i = proj_i_ref[0]             # [TI, 4*HP]  bf16 (this row tile)
    proj_j = proj_j_ref[0]             # [NP, 4*HP]  bf16 (resident across i steps)
    ti = proj_i.shape[0]
    npts = proj_j.shape[0]

    def head(l_off, r_off, wo_ref, bo_ref, red_ref, need_probs):
        # f32 add + ReLU (v5e-friendly VPU path); bf16 only as the MXU operand.
        left = proj_i[:, l_off:l_off + hp].astype(jnp.float32)
        right = proj_j[:, r_off:r_off + hp].astype(jnp.float32)
        pair_bf = jnp.maximum(left[:, None, :] + right[None, :, :], 0.0
                              ).astype(jnp.bfloat16).reshape(ti * npts, hp)
        logits = (jnp.dot(pair_bf, wo_ref[...], preferred_element_type=jnp.float32)
                  + bo_ref[...])                                    # [rows, NBTp]
        e = jnp.exp(logits - jnp.max(logits, axis=-1, keepdims=True))
        # softmax denominator + expectation as one skinny MXU matmul (XLU -> MXU)
        red2 = jnp.dot(e, red_ref[...], preferred_element_type=jnp.float32)  # [rows, 2]
        red3 = red2.reshape(ti, npts, 2)
        denom = jnp.sum(red3[:, :, 0:1], axis=-1)                   # [TI, NP]
        numer = jnp.sum(red3[:, :, 1:2], axis=-1)                   # [TI, NP]
        expv = numer * pl.reciprocal(denom, approx=True)
        if need_probs:
            inv2 = pl.reciprocal(red2[:, 0:1], approx=True)         # [rows, 1]
            probs = (e * inv2).astype(jnp.bfloat16).reshape(ti, npts, -1)
            return expv, probs
        return expv, None

    # ---- TM-score head ------------------------------------------------------
    exp_dist, _ = head(0, hp, two_ref, tbo_ref, tred_ref, False)
    dist_ref[0] = exp_dist.astype(jnp.bfloat16)

    nres = jnp.maximum(jnp.sum(m_row), 19.0)
    d0 = jnp.maximum(1.24 * jnp.exp(jnp.log(nres - 15.0) / 3.0) - 1.8, 1.0)
    xd = exp_dist * (1.0 / d0)
    tm_terms = 1.0 / (1.0 + xd * xd)          # exact: tm_score ranks structures
    pair_mask = m_i * m_row                    # [TI, NP]
    denom_res = jnp.maximum(jnp.sum(m_row), 1.0)
    per_i = jnp.sum(tm_terms * pair_mask, axis=1, keepdims=True) / denom_res
    # masked per-row TM contributions; the max over rows happens in the wrapper
    ptm_rows_ref[0] = per_i * m_i - 1e9 * (1.0 - m_i)

    # ---- aligned-error head -------------------------------------------------
    exp_err, probs_e = head(2 * hp, 3 * hp, ewo_ref, ebo_ref, ered_ref, True)
    eerr_ref[0] = exp_err.astype(jnp.bfloat16)
    eprob_ref[0] = probs_e[:, :, :nb_t]        # only the TRUE bins hit HBM


# ----------------------------- wrapper -------------------------------------- #

def confidence_predictor(representations, mask, params):
    """Returns the same dict structure as ConfidencePredictor.forward."""
    B, N, D = representations.shape
    H = params["w1"].shape[1]
    NB_L = params["w2"].shape[1]
    NB_T = params["tm_wo"].shape[1]

    # ---- padded / tiled geometry (lane-dense compute dims) --------------------
    DP = _round_up(D, 128)
    HP = _round_up(H, 128)
    NBL = _round_up(NB_L, 128)
    NBT = _round_up(NB_T, 128)
    NP = _round_up(N, 8)          # row padding only; TI/TQ divide NP exactly

    # ---- generation-aware VMEM budget -----------------------------------------
    cap = _vmem_capacity_bytes()
    step_budget = (cap * 3) // 8                                   # 24 MiB @64, 48 MiB @128
    vmem_limit = int(max(32 << 20, min((cap * 3) // 4, cap - (16 << 20))))

    def pair_step_bytes(ti):
        pairs = ti * NP
        per_pair = (HP * 4 + HP * 2        # f32 pair slab + bf16 MXU operand
                    + 2 * NBT * 4          # logits + exp (heads run sequentially)
                    + NBT * 2              # bf16 probs copy (error head)
                    + 128 * 4              # lane-padded [rows, 2] reduce result
                    + 2 * 128 * 2          # double-buffered error-prob out block
                    + 48)                  # expv maps / masks / bf16 dist+err outs
        fixed = (2 * NP * 4 * HP * 2       # double-buffered resident right projections
                 + 4 * HP * NBT * 2        # double-buffered bf16 output weights
                 + 4 * NP * 8)             # masks
        return pairs * per_pair + fixed

    def quality_step_bytes(tq):
        per_row = (DP * (4 + 4 + 4 + 2)            # x, centered, normed, bf16 copy
                   + 4 * HP * (4 + 2 * 2)          # proj f32 + dbl-buffered bf16 out
                   + HP * (4 + 2)                  # hidden + bf16 copy
                   + NBL * (2 * 4)                 # logits + exp
                   + NB_L * 2 * 2 + 64)
        fixed = 2 * 2 * (DP * HP + DP * 4 * HP + HP * NBL) + (1 << 16)
        return tq * per_row + fixed

    def pick_tile(cap_rows, bytes_fn):
        best, t = 8, 16
        while t <= min(NP, cap_rows):
            if NP % t == 0 and bytes_fn(t) <= step_budget:
                best = t
            t += 8
        return best

    TI = pick_tile(256, pair_step_bytes)
    TQ = pick_tile(512, quality_step_bytes)
    NI = NP // TI
    NQ = NP // TQ

    # ---- pad activations / mask ------------------------------------------------
    xp = jnp.pad(representations, ((0, 0), (0, NP - N), (0, DP - D)))
    mf = mask.astype(jnp.float32)
    mp = jnp.pad(mf, ((0, 0), (0, NP - N)))
    mask_row = mp.reshape(B, 1, NP)
    mask_col = mp.reshape(B, NP, 1)
    fmask = jnp.concatenate([jnp.ones((1, D), jnp.float32),
                             jnp.zeros((1, DP - D), jnp.float32)], axis=1)

    # ---- pad parameters (zeros; padded bin logits get a -1e9 bias) --------------
    def padw(a, rows, cols, col_fill=0.0, dtype=jnp.float32):
        a = a.astype(jnp.float32)
        r, c = a.shape
        if cols > c:
            a = jnp.concatenate([a, jnp.full((r, cols - c), col_fill, a.dtype)], axis=1)
        if rows > r:
            a = jnp.concatenate([a, jnp.zeros((rows - r, a.shape[1]), a.dtype)], axis=0)
        return a.astype(dtype)

    gamma = padw(params["ln_gamma"], 1, DP)
    beta = padw(params["ln_beta"], 1, DP)
    w1 = padw(params["w1"], DP, HP, dtype=jnp.bfloat16)
    b1 = padw(params["b1"], 1, HP)
    w2 = padw(params["w2"], HP, NBL, dtype=jnp.bfloat16)
    b2 = padw(params["b2"], 1, NBL, col_fill=_NEG)
    lcent = padw(params["lddt_centers"], 1, NBL)

    # fused left/right projections: [tm_left | tm_right | er_left | er_right]
    wlr = jnp.concatenate(
        [padw(params["tm_wl"], DP, HP), padw(params["tm_wr"], DP, HP),
         padw(params["er_wl"], DP, HP), padw(params["er_wr"], DP, HP)],
        axis=1).astype(jnp.bfloat16)
    blr = jnp.concatenate(
        [padw(params["tm_bl"], 1, HP), padw(params["tm_br"], 1, HP),
         padw(params["er_bl"], 1, HP), padw(params["er_br"], 1, HP)], axis=1)

    two = padw(params["tm_wo"], HP, NBT, dtype=jnp.bfloat16)
    tbo = padw(params["tm_bo"], 1, NBT, col_fill=_NEG)
    ewo = padw(params["er_wo"], HP, NBT, dtype=jnp.bfloat16)
    ebo = padw(params["er_bo"], 1, NBT, col_fill=_NEG)

    def red_mat(centers):
        # [NBT, 2]: column 0 = ones over true bins, column 1 = bin centers.
        ones = jnp.concatenate([jnp.ones((NB_T, 1), jnp.float32),
                                jnp.zeros((NBT - NB_T, 1), jnp.float32)], axis=0)
        cent = padw(centers, 1, NBT).reshape(NBT, 1)
        return jnp.concatenate([ones, cent], axis=1)

    t_red = red_mat(params["dist_centers"])
    e_red = red_mat(params["err_centers"])

    def wspec(shape):
        nd = len(shape)
        return pl.BlockSpec(shape, lambda *args, _nd=nd: (0,) * _nd)

    # ---------------- per-residue quality kernel (grid B x row-tiles) -----------
    proj, bins_p, plddt_p = pl.pallas_call(
        functools.partial(_quality_kernel, d_true=D, nb_l=NB_L),
        out_shape=(
            jax.ShapeDtypeStruct((B, NP, 4 * HP), jnp.bfloat16),   # fused projections
            jax.ShapeDtypeStruct((B, NP, NB_L), jnp.bfloat16),     # pLDDT bin logits
            jax.ShapeDtypeStruct((B, NP, 1), jnp.float32),         # pLDDT
        ),
        grid_spec=pltpu.PrefetchScalarGridSpec(
            num_scalar_prefetch=0,
            grid=(B, NQ),
            in_specs=[
                pl.BlockSpec((1, TQ, DP), lambda b, q: (b, q, 0)),
                wspec((1, DP)), wspec((1, DP)), wspec((1, DP)),
                wspec((DP, HP)), wspec((1, HP)),
                wspec((HP, NBL)), wspec((1, NBL)), wspec((1, NBL)),
                wspec((DP, 4 * HP)), wspec((1, 4 * HP)),
            ],
            out_specs=(
                pl.BlockSpec((1, TQ, 4 * HP), lambda b, q: (b, q, 0)),
                pl.BlockSpec((1, TQ, NB_L), lambda b, q: (b, q, 0)),
                pl.BlockSpec((1, TQ, 1), lambda b, q: (b, q, 0)),
            )),
        compiler_params=pltpu.CompilerParams(
            dimension_semantics=("parallel", "parallel"),
            vmem_limit_bytes=vmem_limit),
    )(xp, fmask, gamma, beta, w1, b1, w2, b2, lcent, wlr, blr)

    # ---------------- pairwise TM / aligned-error kernel (grid B x row-tiles) ----
    dist_p, ptm_rows, eprob_p, eerr_p = pl.pallas_call(
        functools.partial(_pairwise_kernel, hp=HP, nb_t=NB_T),
        out_shape=(
            jax.ShapeDtypeStruct((B, NP, NP), jnp.bfloat16),       # expected distance
            jax.ShapeDtypeStruct((B, NP, 1), jnp.float32),         # per-row TM terms
            jax.ShapeDtypeStruct((B, NP, NP, NB_T), jnp.bfloat16), # error bin probs
            jax.ShapeDtypeStruct((B, NP, NP), jnp.bfloat16),       # expected error
        ),
        grid_spec=pltpu.PrefetchScalarGridSpec(
            num_scalar_prefetch=0,
            grid=(B, NI),
            in_specs=[
                pl.BlockSpec((1, 1, NP), lambda b, i: (b, 0, 0)),
                pl.BlockSpec((1, TI, 1), lambda b, i: (b, i, 0)),
                pl.BlockSpec((1, TI, 4 * HP), lambda b, i: (b, i, 0)),
                pl.BlockSpec((1, NP, 4 * HP), lambda b, i: (b, 0, 0)),
                wspec((HP, NBT)), wspec((1, NBT)), wspec((NBT, 2)),
                wspec((HP, NBT)), wspec((1, NBT)), wspec((NBT, 2)),
            ],
            out_specs=(
                pl.BlockSpec((1, TI, NP), lambda b, i: (b, i, 0)),
                pl.BlockSpec((1, TI, 1), lambda b, i: (b, i, 0)),
                pl.BlockSpec((1, TI, NP, NB_T), lambda b, i: (b, i, 0, 0)),
                pl.BlockSpec((1, TI, NP), lambda b, i: (b, i, 0)),
            )),
        compiler_params=pltpu.CompilerParams(
            dimension_semantics=("parallel", "parallel"),
            vmem_limit_bytes=vmem_limit),
    )(mask_row, mask_col, proj, proj, two, tbo, t_red, ewo, ebo, e_red)

    # ---------------- finalize (tiny reductions only; big outputs unsliced) ------
    plddt = plddt_p[:, :N, 0].astype(jnp.float32)                  # [B, N]
    denom = jnp.maximum(jnp.sum(mf, axis=-1), 1.0)
    global_quality = jnp.sum(plddt * mf, axis=-1) / denom          # [B]
    tm_score = jnp.max(ptm_rows[:, :N, 0], axis=-1)                # [B]

    if NP == N:
        aligned_error = eerr_p
        distance_matrix = dist_p
        error_distribution = eprob_p
        plddt_bins = bins_p
    else:  # only when N is not a multiple of 8
        aligned_error = eerr_p[:, :N, :N]
        distance_matrix = dist_p[:, :N, :N]
        error_distribution = eprob_p[:, :N, :N]
        plddt_bins = bins_p[:, :N]

    return {
        "plddt": plddt,                                            # [B, N] f32
        "tm_score": tm_score,                                      # [B]    f32
        "aligned_error": aligned_error,                            # [B, N, N]        bf16
        "global_quality": global_quality,                          # [B]    f32
        "confidence_metrics": {
            "plddt_bins": plddt_bins,                              # [B, N, NB_L]     bf16
            "distance_matrix": distance_matrix,                    # [B, N, N]        bf16
            "error_distribution": error_distribution,              # [B, N, N, NB_T]  bf16
        },
    }


# ----------------------------- params --------------------------------------- #

def init_params(key, input_dim, hidden_dim, num_bins_lddt, num_bins_tm,
                max_error=30.0, max_dist=30.0):
    keys = jax.random.split(key, 8)
    s = 0.05

    def lin(k, i, o):
        return jax.random.normal(k, (i, o), jnp.float32) * s

    def zeros(*shape):
        return jnp.zeros(shape, jnp.float32)

    D, H, NB_L, NB_T = input_dim, hidden_dim, num_bins_lddt, num_bins_tm
    return dict(
        ln_gamma=jnp.ones((1, D), jnp.float32),
        ln_beta=zeros(1, D),
        # pLDDT head
        w1=lin(keys[0], D, H), b1=zeros(1, H),
        w2=lin(keys[1], H, NB_L), b2=zeros(1, NB_L),
        # TM head
        tm_wl=lin(keys[2], D, H), tm_bl=zeros(1, H),
        tm_wr=lin(keys[3], D, H), tm_br=zeros(1, H),
        tm_wo=lin(keys[4], H, NB_T), tm_bo=zeros(1, NB_T),
        # aligned-error head
        er_wl=lin(keys[5], D, H), er_bl=zeros(1, H),
        er_wr=lin(keys[6], D, H), er_br=zeros(1, H),
        er_wo=lin(keys[7], H, NB_T), er_bo=zeros(1, NB_T),
        # bin centers
        lddt_centers=((jnp.arange(NB_L, dtype=jnp.float32) + 0.5) / NB_L * 100.0
                      ).reshape(1, NB_L),
        dist_centers=((jnp.arange(NB_T, dtype=jnp.float32) + 0.5) / NB_T * max_dist
                      ).reshape(1, NB_T),
        err_centers=((jnp.arange(NB_T, dtype=jnp.float32) + 0.5) / NB_T * max_error
                     ).reshape(1, NB_T),
    )


# ----------------------------- reference ------------------------------------ #

def _reference(representations, mask, params):
    """Pure-JAX (no Pallas) forward used for a loose numerical check."""
    x = representations.astype(jnp.float32)
    m = mask.astype(jnp.float32)
    mu = jnp.mean(x, -1, keepdims=True)
    var = jnp.mean((x - mu) ** 2, -1, keepdims=True)
    xn = (x - mu) / jnp.sqrt(var + LN_EPS) * params["ln_gamma"][0] + params["ln_beta"][0]

    h = jax.nn.relu(xn @ params["w1"] + params["b1"][0])
    logits = h @ params["w2"] + params["b2"][0]
    probs = jax.nn.softmax(logits, -1)
    plddt = jnp.sum(probs * params["lddt_centers"][0], -1)
    denom = jnp.maximum(jnp.sum(m, -1), 1.0)
    gq = jnp.sum(plddt * m, -1) / denom

    def pair_head(wl, bl, wr, br, wo, bo, cent):
        left = xn @ wl + bl[0]
        right = xn @ wr + br[0]
        pair = jax.nn.relu(left[:, :, None, :] + right[:, None, :, :])
        lg = pair @ wo + bo[0]
        pr = jax.nn.softmax(lg, -1)
        return jnp.sum(pr * cent[0], -1), pr

    exp_dist, _ = pair_head(params["tm_wl"], params["tm_bl"], params["tm_wr"],
                            params["tm_br"], params["tm_wo"], params["tm_bo"],
                            params["dist_centers"])
    nres = jnp.maximum(jnp.sum(m, -1), 19.0)
    d0 = jnp.maximum(1.24 * jnp.exp(jnp.log(nres - 15.0) / 3.0) - 1.8, 1.0)
    pm = m[:, :, None] * m[:, None, :]
    tm_terms = 1.0 / (1.0 + (exp_dist / d0[:, None, None]) ** 2)
    per_i = jnp.sum(tm_terms * pm, -1) / denom[:, None]
    tm = jnp.max(per_i * m - 1e9 * (1.0 - m), -1)

    err, eprob = pair_head(params["er_wl"], params["er_bl"], params["er_wr"],
                           params["er_br"], params["er_wo"], params["er_bo"],
                           params["err_centers"])
    return {"plddt": plddt, "global_quality": gq, "tm_score": tm,
            "distance_matrix": exp_dist, "aligned_error": err,
            "error_distribution": eprob, "plddt_bins": logits}


# ----------------------------- main ------------------------------------------ #

if __name__ == "__main__":
    B, N, D, H = 2, 8, 32, 32
    NB_L, NB_T = 50, 31
    MAX_ERR = 30.0

    key = jax.random.PRNGKey(0)
    k_x, k_p = jax.random.split(key)

    representations = jax.random.normal(k_x, (B, N, D), jnp.float32)
    mask = jnp.ones((B, N), jnp.float32)
    params = init_params(k_p, D, H, NB_L, NB_T, max_error=MAX_ERR, max_dist=MAX_ERR)

    out = confidence_predictor(representations, mask, params)
    jax.block_until_ready(out)

    # shape checks
    assert out["plddt"].shape == (B, N)
    assert out["tm_score"].shape == (B,)
    assert out["aligned_error"].shape == (B, N, N)
    assert out["global_quality"].shape == (B,)
    assert out["confidence_metrics"]["plddt_bins"].shape == (B, N, NB_L)
    assert out["confidence_metrics"]["distance_matrix"].shape == (B, N, N)
    assert out["confidence_metrics"]["error_distribution"].shape == (B, N, N, NB_T)

    # loose numerical check vs. pure-JAX reference (bf16 MXU/stores + approx recip)
    ref = _reference(representations, mask, params)

    def f32(a):
        return np.asarray(jnp.asarray(a, jnp.float32))

    np.testing.assert_allclose(f32(out["plddt"]), f32(ref["plddt"]), rtol=5e-2, atol=5e-2)
    np.testing.assert_allclose(f32(out["global_quality"]), f32(ref["global_quality"]),
                               rtol=5e-2, atol=5e-2)
    np.testing.assert_allclose(f32(out["tm_score"]), f32(ref["tm_score"]),
                               rtol=5e-2, atol=5e-2)
    np.testing.assert_allclose(f32(out["aligned_error"]), f32(ref["aligned_error"]),
                               rtol=5e-2, atol=5e-2)
    np.testing.assert_allclose(f32(out["confidence_metrics"]["distance_matrix"]),
                               f32(ref["distance_matrix"]), rtol=5e-2, atol=5e-2)
    np.testing.assert_allclose(f32(out["confidence_metrics"]["error_distribution"]),
                               f32(ref["error_distribution"]), rtol=5e-2, atol=5e-2)
    np.testing.assert_allclose(f32(out["confidence_metrics"]["plddt_bins"]),
                               f32(ref["plddt_bins"]), rtol=5e-2, atol=5e-2)

    print("KERNEL_OK")
</pallas_src>

<mosaic_0001>
module attributes {stable_mosaic.version = 11 : i64} {
  func.func @_quality_kernel(%arg0: i32, %arg1: i32, %arg2: memref<1x8x128xf32, #tpu.memory_space<vmem>>, %arg3: memref<1x128xf32, #tpu.memory_space<vmem>>, %arg4: memref<1x128xf32, #tpu.memory_space<vmem>>, %arg5: memref<1x128xf32, #tpu.memory_space<vmem>>, %arg6: memref<128x128xbf16, #tpu.memory_space<vmem>>, %arg7: memref<1x128xf32, #tpu.memory_space<vmem>>, %arg8: memref<128x128xbf16, #tpu.memory_space<vmem>>, %arg9: memref<1x128xf32, #tpu.memory_space<vmem>>, %arg10: memref<1x128xf32, #tpu.memory_space<vmem>>, %arg11: memref<128x512xbf16, #tpu.memory_space<vmem>>, %arg12: memref<1x512xf32, #tpu.memory_space<vmem>>, %arg13: memref<1x8x512xbf16, #tpu.memory_space<vmem>>, %arg14: memref<1x8x50xbf16, #tpu.memory_space<vmem>>, %arg15: memref<1x8x1xf32, #tpu.memory_space<vmem>>) attributes {dimension_semantics = [#tpu.dimension_semantics<parallel>, #tpu.dimension_semantics<parallel>], iteration_bounds = array<i64: 2, 1>, scalar_prefetch = 0 : i64, scratch_operands = 0 : i64, tpu.core_type = #tpu.core_type<tc>, window_params = [{transform_indices = @transform_0, window_bounds = array<i64: 1, 8, 128>}, {pipeline_mode = #tpu.pipeline_mode<synchronous>, transform_indices = @transform_1, window_bounds = array<i64: 1, 128>}, {pipeline_mode = #tpu.pipeline_mode<synchronous>, transform_indices = @transform_2, window_bounds = array<i64: 1, 128>}, {pipeline_mode = #tpu.pipeline_mode<synchronous>, transform_indices = @transform_3, window_bounds = array<i64: 1, 128>}, {pipeline_mode = #tpu.pipeline_mode<synchronous>, transform_indices = @transform_4, window_bounds = array<i64: 128, 128>}, {pipeline_mode = #tpu.pipeline_mode<synchronous>, transform_indices = @transform_5, window_bounds = array<i64: 1, 128>}, {pipeline_mode = #tpu.pipeline_mode<synchronous>, transform_indices = @transform_6, window_bounds = array<i64: 128, 128>}, {pipeline_mode = #tpu.pipeline_mode<synchronous>, transform_indices = @transform_7, window_bounds = array<i64: 1, 128>}, {pipeline_mode = #tpu.pipeline_mode<synchronous>, transform_indices = @transform_8, window_bounds = array<i64: 1, 128>}, {pipeline_mode = #tpu.pipeline_mode<synchronous>, transform_indices = @transform_9, window_bounds = array<i64: 128, 512>}, {pipeline_mode = #tpu.pipeline_mode<synchronous>, transform_indices = @transform_10, window_bounds = array<i64: 1, 512>}, {transform_indices = @transform_11, window_bounds = array<i64: 1, 8, 512>}, {transform_indices = @transform_12, window_bounds = array<i64: 1, 8, 50>}, {transform_indices = @transform_13, window_bounds = array<i64: 1, 8, 1>}]} {
    %c0 = arith.constant 0 : index
    %c0_0 = arith.constant 0 : index
    %c0_1 = arith.constant 0 : index
    %0 = vector.load %arg2[%c0, %c0_0, %c0_1] : memref<1x8x128xf32, #tpu.memory_space<vmem>>, vector<1x8x128xf32>
    %1 = vector.shape_cast %0 : vector<1x8x128xf32> to vector<8x128xf32>
    %cst = arith.constant dense<0.000000e+00> : vector<8xf32>
    %2 = vector.multi_reduction <add>, %1, %cst [1] : vector<8x128xf32> to vector<8xf32>
    %3 = vector.shape_cast %2 : vector<8xf32> to vector<8x1xf32>
    %cst_2 = arith.constant 3.125000e-02 : f32
    %4 = vector.broadcast %cst_2 : f32 to vector<8x1xf32>
    %5 = arith.mulf %3, %4 : vector<8x1xf32>
    %6 = vector.broadcast %5 : vector<8x1xf32> to vector<8x128xf32>
    %7 = arith.subf %1, %6 : vector<8x128xf32>
    %c0_3 = arith.constant 0 : index
    %c0_4 = arith.constant 0 : index
    %8 = vector.load %arg3[%c0_3, %c0_4] : memref<1x128xf32, #tpu.memory_space<vmem>>, vector<1x128xf32>
    %9 = vector.broadcast %8 : vector<1x128xf32> to vector<8x128xf32>
    %10 = arith.mulf %7, %9 : vector<8x128xf32>
    %11 = arith.mulf %10, %10 : vector<8x128xf32>
    %cst_5 = arith.constant dense<0.000000e+00> : vector<8xf32>
    %12 = vector.multi_reduction <add>, %11, %cst_5 [1] : vector<8x128xf32> to vector<8xf32>
    %13 = vector.shape_cast %12 : vector<8xf32> to vector<8x1xf32>
    %cst_6 = arith.constant 3.125000e-02 : f32
    %14 = vector.broadcast %cst_6 : f32 to vector<8x1xf32>
    %15 = arith.mulf %13, %14 : vector<8x1xf32>
    %cst_7 = arith.constant 9.99999974E-6 : f32
    %16 = vector.broadcast %cst_7 : f32 to vector<8x1xf32>
    %17 = arith.addf %15, %16 : vector<8x1xf32>
    %18 = math.rsqrt %17 : vector<8x1xf32>
    %19 = vector.broadcast %18 : vector<8x1xf32> to vector<8x128xf32>
    %20 = arith.mulf %10, %19 : vector<8x128xf32>
    %c0_8 = arith.constant 0 : index
    %c0_9 = arith.constant 0 : index
    %21 = vector.load %arg4[%c0_8, %c0_9] : memref<1x128xf32, #tpu.memory_space<vmem>>, vector<1x128xf32>
    %22 = vector.broadcast %21 : vector<1x128xf32> to vector<8x128xf32>
    %23 = arith.mulf %20, %22 : vector<8x128xf32>
    %c0_10 = arith.constant 0 : index
    %c0_11 = arith.constant 0 : index
    %24 = vector.load %arg5[%c0_10, %c0_11] : memref<1x128xf32, #tpu.memory_space<vmem>>, vector<1x128xf32>
    %25 = vector.broadcast %24 : vector<1x128xf32> to vector<8x128xf32>
    %26 = arith.addf %23, %25 : vector<8x128xf32>
    %27 = arith.truncf %26 : vector<8x128xf32> to vector<8x128xbf16>
    %c0_12 = arith.constant 0 : index
    %c0_13 = arith.constant 0 : index
    %28 = vector.load %arg11[%c0_12, %c0_13] : memref<128x512xbf16, #tpu.memory_space<vmem>>, vector<128x512xbf16>
    %cst_14 = arith.constant dense<0.000000e+00> : vector<8x512xf32>
    %29 = tpu.matmul %27, %28, %cst_14 {dimension_numbers = #tpu.dot_dimension_numbers<[1], [0], [0], [1], [0, 0, 1, 1], [], []>} : vector<8x128xbf16>, vector<128x512xbf16>, vector<8x512xf32> -> vector<8x512xf32>
    %c0_15 = arith.constant 0 : index
    %c0_16 = arith.constant 0 : index
    %30 = vector.load %arg12[%c0_15, %c0_16] : memref<1x512xf32, #tpu.memory_space<vmem>>, vector<1x512xf32>
    %31 = vector.broadcast %30 : vector<1x512xf32> to vector<8x512xf32>
    %32 = arith.addf %29, %31 : vector<8x512xf32>
    %33 = arith.truncf %32 : vector<8x512xf32> to vector<8x512xbf16>
    %c0_17 = arith.constant 0 : index
    %c0_18 = arith.constant 0 : index
    %c0_19 = arith.constant 0 : index
    %34 = vector.load %arg13[%c0_17, %c0_18, %c0_19] : memref<1x8x512xbf16, #tpu.memory_space<vmem>>, vector<1x8x512xbf16>
    %35 = vector.shape_cast %34 : vector<1x8x512xbf16> to vector<8x512xbf16>
    %36 = vector.shape_cast %33 : vector<8x512xbf16> to vector<1x8x512xbf16>
    tpu.vector_store %arg13[%c0_17, %c0_18, %c0_19], %36 {strides = array<i32>} : memref<1x8x512xbf16, #tpu.memory_space<vmem>>, vector<1x8x512xbf16>,
    %c0_20 = arith.constant 0 : index
    %c0_21 = arith.constant 0 : index
    %37 = vector.load %arg6[%c0_20, %c0_21] : memref<128x128xbf16, #tpu.memory_space<vmem>>, vector<128x128xbf16>
    %cst_22 = arith.constant dense<0.000000e+00> : vector<8x128xf32>
    %38 = tpu.matmul %27, %37, %cst_22 {dimension_numbers = #tpu.dot_dimension_numbers<[1], [0], [0], [1], [0, 0, 1, 1], [], []>} : vector<8x128xbf16>, vector<128x128xbf16>, vector<8x128xf32> -> vector<8x128xf32>
    %c0_23 = arith.constant 0 : index
    %c0_24 = arith.constant 0 : index
    %39 = vector.load %arg7[%c0_23, %c0_24] : memref<1x128xf32, #tpu.memory_space<vmem>>, vector<1x128xf32>
    %40 = vector.broadcast %39 : vector<1x128xf32> to vector<8x128xf32>
    %41 = arith.addf %38, %40 : vector<8x128xf32>
    %cst_25 = arith.constant 0.000000e+00 : f32
    %42 = vector.broadcast %cst_25 : f32 to vector<8x128xf32>
    %43 = arith.maximumf %41, %42 : vector<8x128xf32>
    %44 = arith.truncf %43 : vector<8x128xf32> to vector<8x128xbf16>
    %c0_26 = arith.constant 0 : index
    %c0_27 = arith.constant 0 : index
    %45 = vector.load %arg8[%c0_26, %c0_27] : memref<128x128xbf16, #tpu.memory_space<vmem>>, vector<128x128xbf16>
    %cst_28 = arith.constant dense<0.000000e+00> : vector<8x128xf32>
    %46 = tpu.matmul %44, %45, %cst_28 {dimension_numbers = #tpu.dot_dimension_numbers<[1], [0], [0], [1], [0, 0, 1, 1], [], []>} : vector<8x128xbf16>, vector<128x128xbf16>, vector<8x128xf32> -> vector<8x128xf32>
    %c0_29 = arith.constant 0 : index
    %c0_30 = arith.constant 0 : index
    %47 = vector.load %arg9[%c0_29, %c0_30] : memref<1x128xf32, #tpu.memory_space<vmem>>, vector<1x128xf32>
    %48 = vector.broadcast %47 : vector<1x128xf32> to vector<8x128xf32>
    %49 = arith.addf %46, %48 : vector<8x128xf32>
    %50 = vector.extract_strided_slice %49 {offsets = [0, 0], sizes = [8, 50], strides = [1, 1]} : vector<8x128xf32> to vector<8x50xf32>
    %51 = arith.truncf %50 : vector<8x50xf32> to vector<8x50xbf16>
    %c0_31 = arith.constant 0 : index
    %c0_32 = arith.constant 0 : index
    %c0_33 = arith.constant 0 : index
    %52 = vector.load %arg14[%c0_31, %c0_32, %c0_33] : memref<1x8x50xbf16, #tpu.memory_space<vmem>>, vector<1x8x50xbf16>
    %53 = vector.shape_cast %52 : vector<1x8x50xbf16> to vector<8x50xbf16>
    %54 = vector.shape_cast %51 : vector<8x50xbf16> to vector<1x8x50xbf16>
    tpu.vector_store %arg14[%c0_31, %c0_32, %c0_33], %54 {strides = array<i32>} : memref<1x8x50xbf16, #tpu.memory_space<vmem>>, vector<1x8x50xbf16>,
    %cst_34 = arith.constant dense<0xFF800000> : vector<8xf32>
    %55 = vector.multi_reduction <maximumf>, %49, %cst_34 [1] : vector<8x128xf32> to vector<8xf32>
    %56 = vector.shape_cast %55 : vector<8xf32> to vector<8x1xf32>
    %57 = vector.broadcast %56 : vector<8x1xf32> to vector<8x128xf32>
    %58 = arith.subf %49, %57 : vector<8x128xf32>
    %59 = math.exp %58 : vector<8x128xf32>
    %cst_35 = arith.constant dense<0.000000e+00> : vector<8xf32>
    %60 = vector.multi_reduction <add>, %59, %cst_35 [1] : vector<8x128xf32> to vector<8xf32>
    %61 = vector.shape_cast %60 : vector<8xf32> to vector<8x1xf32>
    %62 = tpu.reciprocal %61 {approx = true} : vector<8x1xf32> -> vector<8x1xf32>
    %c0_36 = arith.constant 0 : index
    %c0_37 = arith.constant 0 : index
    %63 = vector.load %arg10[%c0_36, %c0_37] : memref<1x128xf32, #tpu.memory_space<vmem>>, vector<1x128xf32>
    %64 = vector.broadcast %63 : vector<1x128xf32> to vector<8x128xf32>
    %65 = arith.mulf %59, %64 : vector<8x128xf32>
    %cst_38 = arith.constant dense<0.000000e+00> : vector<8xf32>
    %66 = vector.multi_reduction <add>, %65, %cst_38 [1] : vector<8x128xf32> to vector<8xf32>
    %67 = vector.shape_cast %66 : vector<8xf32> to vector<8x1xf32>
    %68 = arith.mulf %67, %62 : vector<8x1xf32>
    %c0_39 = arith.constant 0 : index
    %c0_40 = arith.constant 0 : index
    %c0_41 = arith.constant 0 : index
    %69 = vector.load %arg15[%c0_39, %c0_40, %c0_41] : memref<1x8x1xf32, #tpu.memory_space<vmem>>, vector<1x8x1xf32>
    %70 = vector.shape_cast %69 : vector<1x8x1xf32> to vector<8x1xf32>
    %71 = vector.shape_cast %68 : vector<8x1xf32> to vector<1x8x1xf32>
    tpu.vector_store %arg15[%c0_39, %c0_40, %c0_41], %71 {strides = array<i32>} : memref<1x8x1xf32, #tpu.memory_space<vmem>>, vector<1x8x1xf32>,
    return
  }
  func.func @transform_0(%arg0: i32, %arg1: i32) -> (i32, i32, i32) {
    %c0_i32 = arith.constant 0 : i32
    %c0_i32_0 = arith.constant 0 : i32
    return %arg0, %arg1, %c0_i32 : i32, i32, i32
  }
  func.func @transform_1(%arg0: i32, %arg1: i32) -> (i32, i32) {
    %c0_i32 = arith.constant 0 : i32
    %c0_i32_0 = arith.constant 0 : i32
    %c0_i32_1 = arith.constant 0 : i32
    return %c0_i32, %c0_i32_0 : i32, i32
  }
  func.func @transform_2(%arg0: i32, %arg1: i32) -> (i32, i32) {
    %c0_i32 = arith.constant 0 : i32
    %c0_i32_0 = arith.constant 0 : i32
    %c0_i32_1 = arith.constant 0 : i32
    return %c0_i32, %c0_i32_0 : i32, i32
  }
  func.func @transform_3(%arg0: i32, %arg1: i32) -> (i32, i32) {
    %c0_i32 = arith.constant 0 : i32
    %c0_i32_0 = arith.constant 0 : i32
    %c0_i32_1 = arith.constant 0 : i32
    return %c0_i32, %c0_i32_0 : i32, i32
  }
  func.func @transform_4(%arg0: i32, %arg1: i32) -> (i32, i32) {
    %c0_i32 = arith.constant 0 : i32
    %c0_i32_0 = arith.constant 0 : i32
    %c0_i32_1 = arith.constant 0 : i32
    return %c0_i32, %c0_i32_0 : i32, i32
  }
  func.func @transform_5(%arg0: i32, %arg1: i32) -> (i32, i32) {
    %c0_i32 = arith.constant 0 : i32
    %c0_i32_0 = arith.constant 0 : i32
    %c0_i32_1 = arith.constant 0 : i32
    return %c0_i32, %c0_i32_0 : i32, i32
  }
  func.func @transform_6(%arg0: i32, %arg1: i32) -> (i32, i32) {
    %c0_i32 = arith.constant 0 : i32
    %c0_i32_0 = arith.constant 0 : i32
    %c0_i32_1 = arith.constant 0 : i32
    return %c0_i32, %c0_i32_0 : i32, i32
  }
  func.func @transform_7(%arg0: i32, %arg1: i32) -> (i32, i32) {
    %c0_i32 = arith.constant 0 : i32
    %c0_i32_0 = arith.constant 0 : i32
    %c0_i32_1 = arith.constant 0 : i32
    return %c0_i32, %c0_i32_0 : i32, i32
  }
  func.func @transform_8(%arg0: i32, %arg1: i32) -> (i32, i32) {
    %c0_i32 = arith.constant 0 : i32
    %c0_i32_0 = arith.constant 0 : i32
    %c0_i32_1 = arith.constant 0 : i32
    return %c0_i32, %c0_i32_0 : i32, i32
  }
  func.func @transform_9(%arg0: i32, %arg1: i32) -> (i32, i32) {
    %c0_i32 = arith.constant 0 : i32
    %c0_i32_0 = arith.constant 0 : i32
    %c0_i32_1 = arith.constant 0 : i32
    return %c0_i32, %c0_i32_0 : i32, i32
  }
  func.func @transform_10(%arg0: i32, %arg1: i32) -> (i32, i32) {
    %c0_i32 = arith.constant 0 : i32
    %c0_i32_0 = arith.constant 0 : i32
    %c0_i32_1 = arith.constant 0 : i32
    return %c0_i32, %c0_i32_0 : i32, i32
  }
  func.func @transform_11(%arg0: i32, %arg1: i32) -> (i32, i32, i32) {
    %c0_i32 = arith.constant 0 : i32
    %c0_i32_0 = arith.constant 0 : i32
    return %arg0, %arg1, %c0_i32 : i32, i32, i32
  }
  func.func @transform_12(%arg0: i32, %arg1: i32) -> (i32, i32, i32) {
    %c0_i32 = arith.constant 0 : i32
    %c0_i32_0 = arith.constant 0 : i32
    return %arg0, %arg1, %c0_i32 : i32, i32, i32
  }
  func.func @transform_13(%arg0: i32, %arg1: i32) -> (i32, i32, i32) {
    %c0_i32 = arith.constant 0 : i32
    %c0_i32_0 = arith.constant 0 : i32
    return %arg0, %arg1, %c0_i32 : i32, i32, i32
  }
}

</mosaic_0001>

<bundles_post_ra>
// kernel: tpu_custom_call.1
= control target key start
LH: loop header
LB: loop body
LE: loop exit
PB: predicated region body
PF: predicated region fallthrough
CT: control target
= control target key end

     0   :  { %s2239_s0 = inlined_call_operand.hbm [shape: f32[2,8,128], index: 0, kind: input, shape index: {}]   ;;  %s2240_s1 = inlined_call_operand.vmem [shape: f32[1,128], index: 1, kind: input, shape index: {}]   ;;  %s2241_s2 = inlined_call_operand.vmem [shape: f32[1,128], index: 2, kind: input, shape index: {}]   ;;  %s2242_s3 = inlined_call_operand.vmem [shape: f32[1,128], index: 3, kind: input, shape index: {}]   ;;  %s2243_s4 = inlined_call_operand.hbm [shape: bf16[128,128], index: 4, kind: input, shape index: {}]   ;;  %s2244_s5 = inlined_call_operand.vmem [shape: f32[1,128], index: 5, kind: input, shape index: {}]   ;;  %s2245_s6 = inlined_call_operand.hbm [shape: bf16[128,128], index: 6, kind: input, shape index: {}]   ;;  %s2246_s7 = inlined_call_operand.vmem [shape: f32[1,128], index: 7, kind: input, shape index: {}]   ;;  %s2247_s8 = inlined_call_operand.vmem [shape: f32[1,128], index: 8, kind: input, shape index: {}]   ;;  %s2248_s9 = inlined_call_operand.hbm [shape: bf16[128,512], index: 9, kind: input, shape index: {}]   ;;  %s2249_s10 = inlined_call_operand.vmem [shape: f32[1,512], index: 10, kind: input, shape index: {}]   ;;  %s2250_s11 = inlined_call_operand.hbm [shape: bf16[2,8,512], index: 11, kind: output, shape index: {0}]   ;;  %s2251_s12 = inlined_call_operand.hbm [shape: bf16[2,8,50], index: 12, kind: output, shape index: {1}]   ;;  %s2252_s13 = inlined_call_operand.vmem [shape: f32[2,8,1], index: 13, kind: output, shape index: {2}]  }
   0x1   :  { %2262 = sst [smem:[#allocation21_spill]] %s2239_s0 }
   0x2   :  { %2263 = sst [smem:[#allocation22_spill]] %s2243_s4 }
   0x3   :  { %2264 = sst [smem:[#allocation23_spill]] %s2245_s6 }
   0x4   :  { %2265 = sst [smem:[#allocation24_spill]] %s2248_s9 }
   0x5   :  { %2266 = sst [smem:[#allocation25_spill]] %s2250_s11 }
   0x6   :  { %2267 = sst [smem:[#allocation26_spill]] %s2251_s12 }
   0x7   :  { %2268 = sst [smem:[#allocation27_spill]] %s2252_s13 }
   0x8   :  { %19 = vsyncpa [#allocation3], 0 }
   0x9   :  { %21 = vsyncpa [#allocation3 + $0x1], 0 }
   0xa   :  { %22 = vsyncpa [#allocation6], 0 }
   0xb   :  { %23 = vsyncpa [#allocation9], 0 }
   0xc   :  { %24 = vsyncpa [#allocation4], 0 }
   0xd   :  { %26 = vsyncpa [#allocation4 + $0x1], 0 }
   0xe   :  { %27 = vsyncpa [#allocation12], 0 }
   0xf   :  { %29 = vsyncpa [#allocation12 + $0x1], 0  ;;  %s1994_s25 = smov 0   ;;  %s1996_s26 = smov 0  }
  0x10   :  { %s1998_s27 = smov 0   ;;  %s2000_s28 = smov 0  }
  0x11   :  { %s2002_s29 = smov 0   ;;  %s2004_s30 = smov 0  }
  0x12 LB: > { %2269 = sst [smem:[#allocation18_spill]] %s1889_s25  ;;  %s1369_s14 = sadd.s32 4294967295, %s1909_s30   ;;  %s1909_s30 = sphi %s2004_s30, %s35_s30   ;;  %s1905_s29 = sphi %s2002_s29, %s2299_s29   ;;  %s1901_s28 = sphi %s2000_s28, %s2298_s28   ;;  %s1897_s27 = sphi %s1998_s27, %s2297_s27   ;;  %s1893_s26 = sphi %s1996_s26, %s2296_s26   ;;  %s1889_s25 = sphi %s1994_s25, %s2295_s25  }
  0x13   : > { %s1370_s15 = sadd.s32 4294967294, %s1909_s30   ;;  %p69_p0 = scmp.ne.s32.totalorder %s1893_s26, %s1889_s25 }
  0x14   : > { %p2028_p1 = scmp.eq.s32.totalorder %s1369_s14, 0  ;;  %p2032_p2 = scmp.eq.s32.totalorder %s1369_s14, 1 }
  0x15   : > { %p311_p3 = scmp.eq.s32.totalorder %s1370_s15, 1  ;;  %p1371_p5 = scmp.ge.s32.totalorder %s1909_s30, 1 }
  0x16   : > { %s2270_s16 = scalar_select %p2028_p1, 1, 0 }
  0x17   : > { %p2038_p4 = por %p2028_p1, %p69_p0  ;;  %p2043_p6 = por %p311_p3, %p69_p0 }
  0x18   : > { %p374_p7 = scmp.lt.s32.totalorder %s1909_s30, 3  ;;  %s1911_s21 = smov [#allocation5]  }
  0x19   : > { %s2272_s18 = scalar_select %p2038_p4, 1, 0 }
  0x1a   : > { %s2273_s19 = scalar_select %p2043_p6, 1, 0 }
  0x1b   : > { %p2048_p8 = pnand %p1371_p5, %p374_p7  ;;  %s395_s22 = sshll.u32 %s1911_s21, 4  ;;  %s396_s22 = int_to_ptr.vmem [resolvable:$true] %s395_s22 }
  0x1c   : > { %2274 = sst [smem:[#allocation19_spill]] %s2273_s19  ;;  %s1912_s24 = smov [#allocation7]  }
  0x1d   : > { %s2275_s20 = scalar_select %p2048_p8, 1, 0 }
  0x1e   : > { %p1528_p9 = pneg %p2048_p8  ;;  %s411_s14 = sshll.u32 %s1912_s24, 4  ;;  %s412_s14 = int_to_ptr.vmem [resolvable:$true] %s411_s14 }
  0x1f   : > { %s1913_s15 = smov [#allocation8]   ;;  %s1696_s25 = scalar_lea.vmem %s396_s22, 1024 }
  0x20   : > { %p2057_p11 = pnand %p1528_p9, %p2028_p1  ;;  %s430_s19 = sshll.u32 %s1913_s15, 4  ;;  %s431_s19 = int_to_ptr.vmem [resolvable:$true] %s430_s19 }
  0x21   : > { %p1697_p13 = scmp.ne.s32.totalorder %s396_s22, %s1696_s25  ;;  %p1704_p5 = scmp.lt.s32.totalorder %s396_s22, %s396_s22 }
  0x22   : > { %p1687_p12 = pneg %p2057_p11  ;;  %p1705_p7 = scmp.lt.s32.totalorder %s1696_s25, %s1696_s25 }
  0x24   : > { %p1699_p0 = pnand %p1697_p13, %p1687_p12  ;;  %p1706_p9 = por %p1705_p7, %p1704_p5 }
  0x26   : > { %p1700_p3 = pneg %p1699_p0 }
  0x28   : > { %p1707_p10 = pnand %p1706_p9, %p1700_p3 }
  0x2a   : > { %1710 = shalt.err (!%p1707_p10)
}
  0x2b   : > { %s1914_s21 = smov 64   ;;  %s1915_s24 = smov 4  }
  0x2c   : > { %s2277_s4 = sld [smem:[#allocation22_spill]]  ;;  %s1722_s12 = scalar_lea.vmem %s412_s14, 1024 }
  0x2d   : > { %p1723_p6 = scmp.ne.s32.totalorder %s412_s14, %s1722_s12  ;;  %p1730_p1 = scmp.lt.s32.totalorder %s412_s14, %s412_s14 }
  0x2e   : > { %p1731_p4 = scmp.lt.s32.totalorder %s1722_s12, %s1722_s12 }
  0x2f   : > { %p1725_p13 = pnand %p1723_p6, %p1687_p12 }
  0x30   : > { %p1732_p5 = por %p1731_p4, %p1730_p1 }
  0x31   : > { %p1726_p0 = pneg %p1725_p13 }
  0x32   : > { %1531 = dma.hbm_to_vmem [thread:$0]  (!%p2057_p11), %s2277_s4, 1024, %s396_s22, [#allocation6], %s1914_s21, %s1914_s21, %s1915_s24  }
  0x33   : > { %p1733_p3 = pnand %p1732_p5, %p1726_p0 }
  0x35   : > { %1736 = shalt.err (!%p1733_p3)
}
  0x36   : > { %s2278_s6 = sld [smem:[#allocation23_spill]]  ;;  %s1748_s13 = scalar_lea.vmem %s431_s19, 4096 }
  0x37   : > { %p1749_p10 = scmp.ne.s32.totalorder %s431_s19, %s1748_s13  ;;  %p1756_p9 = scmp.lt.s32.totalorder %s431_s19, %s431_s19 }
  0x38   : > { %p1757_p13 = scmp.lt.s32.totalorder %s1748_s13, %s1748_s13 }
  0x39   : > { %p1751_p7 = pnand %p1749_p10, %p1687_p12 }
  0x3a   : > { %p1758_p8 = por %p1757_p13, %p1756_p9 }
  0x3b   : > { %p1752_p6 = pneg %p1751_p7 }
  0x3c   : > { %1534 = dma.hbm_to_vmem [thread:$0]  (!%p2057_p11), %s2278_s6, 1024, %s412_s14, [#allocation6], %s1914_s21, %s1914_s21, %s1915_s24  }
  0x3d   : > { %p1759_p1 = pnand %p1758_p8, %p1752_p6 }
  0x3f   : > { %1762 = shalt.err (!%p1759_p1)
}
  0x40   : > { %s1916_s12 = smov 256   ;;  %s1917_s11 = smov 16  }
  0x41   : > { %s2279_s9 = sld [smem:[#allocation24_spill]]  ;;  %s56_s21 = sadd.s32 1, %s1897_s27 }
  0x42   : > { %s47_s24 = sadd.s32 1, %s1905_s29  ;;  %p63_p4 = scmp.ne.s32.totalorder %s1897_s27, %s1893_s26 }
  0x43   : > { %p49_p8 = scmp.ge.s32.totalorder %s47_s24, 2  ;;  %p64_p12 = scmp.eq.s32.totalorder %s1909_s30, 0 }
  0x44   : > { %p2094_p0 = por %p2032_p2, %p63_p4  ;;  %p1552_p5 = scmp.lt.s32.totalorder %s1909_s30, 2 }
  0x45   : > { %s2301_s24 = smov (%p49_p8, %s47_s24), 0  ;;  %p65_p3 = por %p64_p12, %p63_p4 }
  0x46   : > { %2281 = sst [smem:[#allocation20_spill]] %s2301_s24  ;;  %s447_s23 = sand.u32 1, %s1897_s27  }
  0x47   : > { %1537 = dma.hbm_to_vmem [thread:$0]  (!%p2057_p11), %s2279_s9, 4096, %s431_s19, [#allocation9], %s1916_s12, %s1916_s12, %s1917_s11  }
  0x48   : > { %s51_s25 = ssub.s32 %s1905_s29, %s2301_s24  ;;  %s1376_s19 = sshll.u32 %s447_s23, 3 }
  0x49   : > { %p54_p10 = scmp.eq.s32.totalorder %s51_s25, 0  ;;  %s1377_s13 = sshll.u32 %s1905_s29, 7 }
  0x4a   : > { %s2282_s0 = sld [smem:[#allocation21_spill]]  ;;  %s451_s14 = scalar_lea.vmem [#allocation2], %s1376_s19 }
  0x4b   : > { %s2106_s12 = scalar_select %p54_p10, %s1897_s27, %s56_s21  }
  0x4c   : > { %s459_s4 = sshll.u32 %s451_s14, 4  ;;  %p2113_p2 = pnand %p1552_p5, %p65_p3  ;;  %s460_s4 = int_to_ptr.vmem [resolvable:$true] %s459_s4 }
  0x4d   : > { %s448_s9 = scalar_lea.sflag [#allocation3], %s447_s23  ;;  %s1776_s25 = scalar_lea.vmem %s460_s4, 128 }
  0x4e   : > { %p1765_p11 = pneg %p2113_p2  ;;  %p1777_p7 = scmp.ne.s32.totalorder %s460_s4, %s1776_s25 }
  0x4f   : > { %s1918_s21 = smov [#allocation2]  }
  0x50   : > { %s457_s17 = scalar_lea.hbm %s2282_s0, %s1377_s13  ;;  %p1779_p6 = pnand %p1777_p7, %p1765_p11 }
  0x51   : > { %s1781_s24 = sshll.u32 %s1918_s21, 4  ;;  %s1782_s24 = int_to_ptr.vmem [resolvable:$false] %s1781_s24 }
  0x52   : > { %p1780_p9 = pneg %p1779_p6  ;;  %s1783_s13 = scalar_lea.vmem %s1782_s24, 256 }
  0x53   : > { %p1784_p13 = scmp.lt.s32.totalorder %s460_s4, %s1782_s24  ;;  %p1785_p1 = scmp.lt.s32.totalorder %s1783_s13, %s1776_s25 }
  0x55   : > { %p1786_p4 = por %p1785_p1, %p1784_p13 }
  0x57   : > { %p1787_p8 = pnand %p1786_p4, %p1780_p9 }
  0x59   : > { %1790 = shalt.err (!%p1787_p8)
}
  0x5a   : > { %1541 = dma.hbm_to_vmem [thread:$0]  (!%p2113_p2), %s457_s17, 128, %s460_s4, %s448_s9  }
  0x5b   : > { %p2284_p12 = scmp.ne.s32.totalorder %s2275_s20, 0 }
  0x5c   : > { %s2124_s23 = sand.u32 (!%p2284_p12), 1, %s1893_s26   ;;  %p2285_p5 = scmp.ne.s32.totalorder (!%p2284_p12), %s2272_s18, 0 }
  0x5d   : > { %468 = sbr.rel (%p2284_p12) target bundleno = 1152 (0x480), region = 64  ;;  %s1379_s19 = sshll.u32 (!%p2284_p12), %s2124_s23, 3 }
  0x5e   : > { %s471_s11 = scalar_lea.sflag (!%p2284_p12), [#allocation3], %s2124_s23  ;;  %s474_s22 = scalar_lea.vmem (!%p2284_p12), [#allocation2], %s1379_s19 }
  0x62   : > { %1868 = dma.done.wait (%p2285_p5), %s471_s11, 128  }
  0x63   : > { %1870 = vsyncadd (%p2285_p5), %s471_s11, 4294967168  ;;  %p2286_p3 = scmp.ne.s32.totalorder %s2270_s16, 0 }
  0x65   : > { %1872 = dma.done.wait (%p2286_p3), [#allocation6], 2048  }
  0x66   : > { %1874 = vsyncadd (%p2286_p3), [#allocation6], 4294965248 }
  0x67   : > { %1876 = dma.done.wait (%p2286_p3), [#allocation9], 4096  }
  0x68   : > { %1878 = vsyncadd (%p2286_p3), [#allocation9], 4294963200  ;;  %v549_v0 = vld [vmem:[%s474_s22] sm:$0xff]  ;;  %v1919_v33 = vmov 0   ;;  %v1920_v40 = vmov 0.0   ;;  %vm1921_vm0 = vmmov 0  }
  0x69   : > { %550 = vadd.xlane.f32.xlu0 %v549_v0  ;;  %v1615_v1 = vld [vmem:[#allocation8 + $0xe4] ss:$16 sps:$4 sm:$0xff]   ;;  %v1617_v2 = vld [vmem:[#allocation8 + $0xe0] ss:$16 sps:$4 sm:$0xff]   ;;  %v1618_v3 = vld [vmem:[#allocation8 + $0xec] ss:$16 sps:$4 sm:$0xff]   ;;  %832 = vmatprep.mubr.bf16.mxu0 %v1919_v33 }
  0x6a   : > { %v1620_v4 = vld [vmem:[#allocation8 + $0xe8] ss:$16 sps:$4 sm:$0xff]   ;;  %v1621_v5 = vld [vmem:[#allocation8 + $0xc4] ss:$16 sps:$4 sm:$0xff]   ;;  %v1623_v6 = vld [vmem:[#allocation8 + $0xc0] ss:$16 sps:$4 sm:$0xff]   ;;  %800 = vmatprep.subr.bf16.mxu0 %v1615_v1  ;;  %841 = vmatprep.subr.bf16.mxu1 %v1618_v3  ;;  %v620_v3 = vlaneseq }
  0x6b   : > { %v1624_v7 = vld [vmem:[#allocation8 + $0xcc] ss:$16 sps:$4 sm:$0xff]   ;;  %v1626_v8 = vld [vmem:[#allocation8 + $0xc8] ss:$16 sps:$4 sm:$0xff]   ;;  %801 = vmatpush1.bf16.msra.mxu0 %v1617_v2  ;;  %842 = vmatpush1.bf16.msra.mxu1 %v1620_v4  ;;  %v1386_v11 = vld [vmem:[%s2240_s1] ss:$0 sm:$0xff] }
  0x6c   : > { %802 = vmatprep.subr.bf16.mxu0 %v1621_v5  ;;  %843 = vmatprep.subr.bf16.mxu1 %v1624_v7  ;;  %v1627_v15 = vld [vmem:[#allocation8 + $0xa4] ss:$16 sps:$4 sm:$0xff]   ;;  %v1629_v16 = vld [vmem:[#allocation8 + $0xa0] ss:$16 sps:$4 sm:$0xff]   ;;  %v1630_v17 = vld [vmem:[#allocation8 + $0xac] ss:$16 sps:$4 sm:$0xff]  }
  0x6d   : > { %v1632_v18 = vld [vmem:[#allocation8 + $0xa8] ss:$16 sps:$4 sm:$0xff]   ;;  %v1633_v19 = vld [vmem:[#allocation8 + $0x84] ss:$16 sps:$4 sm:$0xff]   ;;  %v1635_v20 = vld [vmem:[#allocation8 + $0x80] ss:$16 sps:$4 sm:$0xff]   ;;  %873 = vmatprep.mubr.bf16.mxu1 %v1919_v33 }
  0x6e   : > { %v1636_v21 = vld [vmem:[#allocation8 + $0x8c] ss:$16 sps:$4 sm:$0xff]   ;;  %v1638_v22 = vld [vmem:[#allocation8 + $0x88] ss:$16 sps:$4 sm:$0xff]   ;;  %v1639_v23 = vld [vmem:[#allocation8 + $0x64] ss:$16 sps:$4 sm:$0xff]  }
  0x6f   : > { %803 = vmatpush1.bf16.msra.mxu0 %v1623_v6  ;;  %844 = vmatpush1.bf16.msra.mxu1 %v1626_v8  ;;  %v1642_v24 = vld [vmem:[#allocation8 + $0x6c] ss:$16 sps:$4 sm:$0xff]   ;;  %v1641_v25 = vld [vmem:[#allocation8 + $0x60] ss:$16 sps:$4 sm:$0xff]   ;;  %v1644_v26 = vld [vmem:[#allocation8 + $0x68] ss:$16 sps:$4 sm:$0xff]  }
  0x70   : > { %804 = vmatprep.subr.bf16.mxu0 %v1627_v15  ;;  %845 = vmatprep.subr.bf16.mxu1 %v1630_v17  ;;  %v1645_v27 = vld [vmem:[#allocation8 + $0x44] ss:$16 sps:$4 sm:$0xff]   ;;  %v1648_v28 = vld [vmem:[#allocation8 + $0x4c] ss:$16 sps:$4 sm:$0xff]   ;;  %v1647_v29 = vld [vmem:[#allocation8 + $0x40] ss:$16 sps:$4 sm:$0xff]  }
  0x71   : > { %v1650_v30 = vld [vmem:[#allocation8 + $0x48] ss:$16 sps:$4 sm:$0xff]   ;;  %v1651_v31 = vld [vmem:[#allocation8 + $0x24] ss:$16 sps:$4 sm:$0xff]   ;;  %v1654_v32 = vld [vmem:[#allocation8 + $0x2c] ss:$16 sps:$4 sm:$0xff]  }
  0x72   : > { %v1653_v34 = vld [vmem:[#allocation8 + $0x20] ss:$16 sps:$4 sm:$0xff]   ;;  %v1656_v35 = vld [vmem:[#allocation8 + $0x28] ss:$16 sps:$4 sm:$0xff]   ;;  %v1657_v36 = vld [vmem:[#allocation8 + $0x4] ss:$16 sps:$4 sm:$0xff]  }
  0x73   : > { %805 = vmatpush1.bf16.msra.mxu0 %v1629_v16  ;;  %846 = vmatpush1.bf16.msra.mxu1 %v1632_v18  ;;  %v1660_v37 = vld [vmem:[#allocation8 + $0xc] ss:$16 sps:$4 sm:$0xff]   ;;  %v1659_v38 = vld [vmem:[#allocation8] ss:$16 sps:$4 sm:$0xff]   ;;  %v1662_v39 = vld [vmem:[#allocation8 + $0x8] ss:$16 sps:$4 sm:$0xff]  }
  0x74   : > { %806 = vmatprep.subr.bf16.mxu0 %v1633_v19  ;;  %847 = vmatprep.subr.bf16.mxu1 %v1636_v21  ;;  %v1387_v45 = vld [vmem:[%s2241_s2] ss:$0 sm:$0xff]  ;;  %v1663_v50 = vld [vmem:[#allocation5 + $0x38] sm:$0xff]   ;;  %v1665_v53 = vld [vmem:[#allocation5 + $0x28] sm:$0xff]   ;;  %v621_v4 = vshrl.u32 %v620_v3, 7  ;;  %s1383_s14 = sshll.u32 %s2124_s23, 4 }
  0x75   : > { %v1388_v47 = vld [vmem:[%s2242_s3] ss:$0 sm:$0xff]  ;;  %v1666_v54 = vld [vmem:[#allocation5 + $0x20] sm:$0xff]   ;;  %v1667_v55 = vld [vmem:[#allocation5 + $0x18] sm:$0xff]   ;;  %s2158_s25 = scalar_lea.vmem [#allocation10], %s1383_s14  ;;  %s1384_s22 = sshll.u32 %s2124_s23, 2 }
  0x76   : > { %v1664_v52 = vld [vmem:[#allocation5 + $0x30] sm:$0xff]   ;;  %v1669_v57 = vld [vmem:[#allocation5 + $0x8] sm:$0xff]   ;;  %v1670_v58 = vld [vmem:[#allocation5] sm:$0xff]   ;;  %v622_v5 = vsub.s32 0, %v621_v4  ;;  %v630_v6 = vsub.s32 2, %v621_v4  ;;  %v626_v7 = vsub.s32 1, %v621_v4 }
  0x77   : > { %807 = vmatpush1.bf16.msra.mxu0 %v1635_v20  ;;  %848 = vmatpush1.bf16.msra.mxu1 %v1638_v22  ;;  %v1668_v56 = vld [vmem:[#allocation5 + $0x10] sm:$0xff]   ;;  %v1671_v59 = vld [vmem:[#allocation7 + $0x38] sm:$0xff]   ;;  %v1673_v61 = vld [vmem:[#allocation7 + $0x28] sm:$0xff]   ;;  %v634_v8 = vsub.s32 3, %v621_v4  ;;  %vm1125_vm1 = vcmask 404480   ;;  %s2169_s4 = scalar_lea.vmem [#allocation11], %s1384_s22 }
  0x78   : > { %808 = vmatprep.subr.bf16.mxu0 %v1639_v23  ;;  %849 = vmatprep.subr.bf16.mxu1 %v1642_v24  ;;  %v1672_v60 = vld [vmem:[#allocation7 + $0x30] sm:$0xff]   ;;  %v1674_v62 = vld [vmem:[#allocation7 + $0x20] sm:$0xff]   ;;  %v1675_v63 = vld [vmem:[#allocation7 + $0x18] sm:$0xff]   ;;  %s1451_s16 = sshll.u32 %s1901_s28, 8  ;;  %s1177_s18 = sshll.u32 %s2158_s25, 4  ;;  %s1178_s18 = int_to_ptr.vmem [resolvable:$true] %s1177_s18 }
  0x79   : > { %v1677_v1 = vld [vmem:[#allocation7 + $0x8] sm:$0xff]   ;;  %v1678_v2 = vld [vmem:[#allocation7] sm:$0xff]   ;;  %s2287_s17 = sld [smem:[#allocation25_spill]]  ;;  %s1149_s21 = scalar_lea.sflag [#allocation4], %s2124_s23 }
  0x7a   : > { %s1791_s13 = scalar_lea.vmem %s1178_s18, 256  ;;  %s1922_s19 = smov [#allocation10]  }
  0x7b   : > { %809 = vmatpush1.bf16.msra.mxu0 %v1641_v25  ;;  %850 = vmatpush1.bf16.msra.mxu1 %v1644_v26  ;;  %p1792_p10 = scmp.ne.s32.totalorder %s1178_s18, %s1791_s13  ;;  %s1795_s11 = sshll.u32 %s1922_s19, 4  ;;  %s1796_s11 = int_to_ptr.vmem [resolvable:$false] %s1795_s11 }
  0x7c   : > { %810 = vmatprep.subr.bf16.mxu0 %v1645_v27  ;;  %851 = vmatprep.subr.bf16.mxu1 %v1648_v28  ;;  %v1423_v28 = vld [vmem:[%s2244_s5] ss:$0 sm:$0xff]  ;;  %s1797_s22 = scalar_lea.vmem %s1796_s11, 512  ;;  %p1798_p7 = scmp.lt.s32.totalorder %s1178_s18, %s1796_s11 }
  0x7d   : > { %p1793_p2 = pnand %p1792_p10, %p2094_p0  ;;  %p1799_p6 = scmp.lt.s32.totalorder %s1797_s22, %s1791_s13 }
  0x7f   : > { %811 = vmatpush1.bf16.msra.mxu0 %v1647_v29  ;;  %852 = vmatpush1.bf16.msra.mxu1 %v1650_v30  ;;  %s1175_s14 = scalar_lea.hbm %s2287_s17, %s1451_s16  ;;  %p1794_p11 = pneg %p1793_p2 }
  0x80   : > { %812 = vmatprep.subr.bf16.mxu0 %v1651_v31  ;;  %853 = vmatprep.subr.bf16.mxu1 %v1654_v32  ;;  %p1800_p9 = por %p1799_p6, %p1798_p7 }
  0x82   : > { %p1801_p13 = pnand %p1800_p9, %p1794_p11 }
  0x83   : > { %813 = vmatpush1.bf16.msra.mxu0 %v1653_v34  ;;  %854 = vmatpush1.bf16.msra.mxu1 %v1656_v35 }
  0x84   : > { %814 = vmatprep.subr.bf16.mxu0 %v1657_v36  ;;  %855 = vmatprep.subr.bf16.mxu1 %v1660_v37  ;;  %v1432_v36 = vld [vmem:[%s2246_s7] ss:$0 sm:$0xff] }
  0x87   : > { %815 = vmatpush1.bf16.msra.mxu0 %v1659_v38  ;;  %856 = vmatpush1.bf16.msra.mxu1 %v1662_v39 }
  0x88   : > { %1470 = vmatprep.subr.bf16.mxu0 %v1920_v40  ;;  %1490 = vmatprep.subr.bf16.mxu1 %v1920_v40 }
  0xf2   : > { %v551_v9 = vpop.xlane.xlu0 %550 }
  0xf3   : > { %v552_v10 = vmul.f32 0.03125, %v551_v9  ;;  %v618_v9 = vld [vmem:[%s2249_s10] sm:$0xf] }
  0xf5   : > { %v553_v12 = vsub.f32 %v549_v0, %v552_v10  ;;  %v1676_v0 = vld [vmem:[#allocation7 + $0x10] sm:$0xff]   ;;  %v623_v10 = vrot.slane %v618_v9, %v622_v5 }
  0xf7   : > { %v2143_v13 = vmul.f32 %v1386_v11, %v553_v12  ;;  %v631_v11 = vrot.slane %v618_v9, %v630_v6  ;;  %v627_v12 = vrot.slane %v618_v9, %v626_v7 }
  0xf9   : > { %v562_v14 = vmul.f32 %v2143_v13, %v2143_v13 }
  0xfb   : > { %563 = vadd.xlane.f32.xlu0 %v562_v14 }
 0x184   : > { %v564_v41 = vpop.xlane.xlu0 %563 }
 0x185   : > { %v565_v42 = vmul.f32 0.03125, %v564_v41 }
 0x187   : > { %v566_v43 = vadd.f32 1e-05, %v565_v42 }
 0x189   : > { %1679 = vrsqrt.f32 %v566_v43 }
 0x196   : > { %v1680_v44 = vpop.eup %1679 }
 0x197   : > { %v568_v46 = vmul.f32 %v1680_v44, %v2143_v13  ;;  %v635_v13 = vrot.slane %v618_v9, %v634_v8 }
 0x199   : > { %v576_v48 = vmul.f32 %v1387_v45, %v568_v46  ;;  %v1441_v46 = vld [vmem:[%s2247_s8] ss:$0 sm:$0xff] }
 0x19b   : > { %v584_v49 = vadd.f32 %v1388_v47, %v576_v48 }
 0x19d   : > { %v585_v51 = vpack.c.bf16 %v584_v49, %v584_v49 }
 0x19f   : > { %833 = vmatmul.mubr.bf16.vlgmr.msra.gmra.mxu0 %v585_v51  ;;  %874 = vmatmul.mubr.bf16.vlgmr.msra.gmra.mxu1 %v585_v51 }
 0x1a0   : > { %1471 = vmatpush3.bf16.msra.mxu0 %v1663_v50  ;;  %1486 = vmatprep.mubr.msk.bf16.mxu0 %vm1921_vm0, %v1920_v40 }
 0x1a1   : > { %1472 = vmatprep.subr.bf16.mxu0 %v1920_v40  ;;  %1506 = vmatprep.mubr.msk.bf16.mxu1 %vm1921_vm0, %v1920_v40 }
 0x1a2   : > { %1491 = vmatpush3.bf16.msra.mxu1 %v1671_v59 }
 0x1a3   : > { %1492 = vmatprep.subr.bf16.mxu1 %v1920_v40 }
 0x1a4   : > { %1473 = vmatpush3.bf16.msra.mxu0 %v1664_v52 }
 0x1a5   : > { %1474 = vmatprep.subr.bf16.mxu0 %v1920_v40 }
 0x1a6   : > { %1493 = vmatpush3.bf16.msra.mxu1 %v1672_v60 }
 0x1a7   : > { %1494 = vmatprep.subr.bf16.mxu1 %v1920_v40 }
 0x1a8   : > { %1475 = vmatpush3.bf16.msra.mxu0 %v1665_v53 }
 0x1a9   : > { %1476 = vmatprep.subr.bf16.mxu0 %v1920_v40 }
 0x1aa   : > { %1495 = vmatpush3.bf16.msra.mxu1 %v1673_v61 }
 0x1ab   : > { %1496 = vmatprep.subr.bf16.mxu1 %v1920_v40 }
 0x1ac   : > { %1477 = vmatpush3.bf16.msra.mxu0 %v1666_v54 }
 0x1ad   : > { %1478 = vmatprep.subr.bf16.mxu0 %v1920_v40 }
 0x1ae   : > { %1497 = vmatpush3.bf16.msra.mxu1 %v1674_v62 }
 0x1af   : > { %1498 = vmatprep.subr.bf16.mxu1 %v1920_v40 }
 0x1b0   : > { %1479 = vmatpush3.bf16.msra.mxu0 %v1667_v55 }
 0x1b1   : > { %1480 = vmatprep.subr.bf16.mxu0 %v1920_v40 }
 0x1b2   : > { %1499 = vmatpush3.bf16.msra.mxu1 %v1675_v63 }
 0x1b3   : > { %1500 = vmatprep.subr.bf16.mxu1 %v1920_v40 }
 0x1b4   : > { %1481 = vmatpush3.bf16.msra.mxu0 %v1668_v56 }
 0x1b5   : > { %1482 = vmatprep.subr.bf16.mxu0 %v1920_v40 }
 0x1b6   : > { %1501 = vmatpush3.bf16.msra.mxu1 %v1676_v0 }
 0x1b7   : > { %1502 = vmatprep.subr.bf16.mxu1 %v1920_v40 }
 0x1b8   : > { %1483 = vmatpush3.bf16.msra.mxu0 %v1669_v57 }
 0x1b9   : > { %1484 = vmatprep.subr.bf16.mxu0 %v1920_v40 }
 0x1ba   : > { %1503 = vmatpush3.bf16.msra.mxu1 %v1677_v1 }
 0x1bb   : > { %1504 = vmatprep.subr.bf16.mxu1 %v1920_v40 }
 0x1bc   : > { %1485 = vmatpush3.bf16.msra.mxu0 %v1670_v58 }
 0x1be   : > { %1505 = vmatpush3.bf16.msra.mxu1 %v1678_v2 }
 0x1bf   : > { %1487 = vmatmul.mubr.bf16.vlgmr.msra.gmra.mxu0 %v585_v51 }
 0x25f   : > { %v834_v14 = vpop.f32.mrf.mxu0  ;;  %v875_v15 = vpop.f32.mrf.mxu1 }
 0x260   : > { %v835_v18 = vadd.f32 %v834_v14, %v623_v10  ;;  %v876_v19 = vadd.f32 %v875_v15, %v631_v11 }
 0x261   : > { %v836_v16 = vpop.f32.mrf.mxu0  ;;  %v877_v17 = vpop.f32.mrf.mxu1 }
 0x262   : > { %v837_v20 = vadd.f32 %v836_v16, %v627_v12  ;;  %v878_v21 = vadd.f32 %v877_v17, %v635_v13 }
 0x263   : > { %v838_v22 = vpop.f32.mrf.mxu0  ;;  %v879_v23 = vpop.f32.mrf.mxu1 }
 0x264   : > { %v1449_v24 = vpack.c.bf16 %v837_v20, %v835_v18  ;;  %v1450_v25 = vpack.c.bf16 %v878_v21, %v876_v19 }
 0x265   : > { %v839_v26 = vpop.f32.mrf.mxu0  ;;  %v880_v27 = vpop.f32.mrf.mxu1 }
 0x266   : > { %898 = vst [vmem:[%s2158_s25] sm:$0xff] %v1449_v24  ;;  %899 = vst [vmem:[%s2158_s25 + $0x8] sm:$0xff] %v1450_v25 }
 0x27f   : > { %v1005_v29 = vpop.f32.mrf.mxu0 }
 0x280   : > { %v1006_v30 = vadd.f32 %v1423_v28, %v1005_v29 }
 0x281   : > { %v1488_v31 = vpop.f32.mrf.mxu0 }
 0x282   : > { %v1011_v32 = vmax.f32 %v1006_v30, 0.0 }
 0x283   : > { %v1008_v33 = vpop.f32.mrf.mxu0 }
 0x284   : > { %v1012_v34 = vpack.c.bf16 %v1011_v32, %v1011_v32 }
 0x285   : > { %v1489_v35 = vpop.f32.mrf.mxu0 }
 0x286   : > { %1507 = vmatmul.mubr.bf16.vlgmr.msra.gmra.mxu1 %v1012_v34 }
 0x346   : > { %v1118_v37 = vpop.f32.mrf.mxu1 }
 0x347   : > { %v1119_v38 = vadd.f32 %v1432_v36, %v1118_v37 }
 0x348   : > { %v1508_v39 = vpop.f32.mrf.mxu1 }
 0x349   : > { %v1124_v40 = vpack.c.bf16 %v1119_v38, %v1119_v38  ;;  %1127 = vmax.xlane.f32.xlu1 %v1119_v38 }
 0x34a   : > { %v1121_v41 = vpop.f32.mrf.mxu1 }
 0x34b   : > { %1126 = vst.msk [vmem:[%s2169_s4] sm:$0xf] %vm1125_vm1, %v1124_v40 }
 0x34c   : > { %v1509_v42 = vpop.f32.mrf.mxu1 }
 0x3d2   : > { %v1128_v43 = vpop.xlane.xlu1 %1127 }
 0x3d3   : > { %v1129_v44 = vsub.f32 %v1119_v38, %v1128_v43 }
 0x3d5   : > { %v1130_v45 = vmul.f32 1.442695, %v1129_v44 }
 0x3d7   : > { %1681 = vpow2.f32 %v1130_v45 }
 0x3e4   : > { %v1682_v47 = vpop.eup %1681 }
 0x3e5   : > { %1132 = vadd.xlane.f32.xlu1 %v1682_v47  ;;  %v1142_v48 = vmul.f32 %v1682_v47, %v1441_v46 }
 0x3e7   : > { %1143 = vadd.xlane.f32.xlu0 %v1142_v48 }
 0x3e8   : > { %1804 = shalt.err (!%p1801_p13)
}
 0x3e9   : > { %s1805_s25 = scalar_lea.hbm %s1175_s14, 256  ;;  %s1809_s16 = scalar_lea.hbm %s2287_s17, 512 }
 0x3ea   : > { %p1806_p1 = scmp.ne.s32.totalorder %s1175_s14, %s1805_s25  ;;  %p1810_p12 = scmp.lt.s32.totalorder %s1175_s14, %s2287_s17 }
 0x3eb   : > { %p1811_p5 = scmp.lt.s32.totalorder %s1809_s16, %s1805_s25 }
 0x3ec   : > { %p1807_p4 = pnand %p1806_p1, %p2094_p0 }
 0x3ed   : > { %p1812_p3 = por %p1811_p5, %p1810_p12 }
 0x3ee   : > { %p1808_p8 = pneg %p1807_p4 }
 0x3f0   : > { %p1813_p10 = pnand %p1812_p3, %p1808_p8 }
 0x3f2   : > { %1816 = shalt.err (!%p1813_p10)
}
 0x3f3   : > { %1524 = dma.vmem_to_hbm [thread:$0]  (%p2094_p0), %s1178_s18, 256, %s1175_s14, %s1149_s21  }
 0x3f4   : > { %s1446_s13 = sshll.u32 %s1901_s28, 6  ;;  %s1191_s19 = sshll.u32 %s2169_s4, 4  ;;  %s1192_s19 = int_to_ptr.vmem [resolvable:$true] %s1191_s19 }
 0x3f5   : > { %s2288_s6 = sld [smem:[#allocation26_spill]]  ;;  %s1154_s20 = scalar_lea.sflag [#allocation12], %s2124_s23 }
 0x3f6   : > { %s1817_s24 = scalar_lea.vmem %s1192_s19, 64  ;;  %s1923_s25 = smov [#allocation11]  }
 0x3f7   : > { %p1818_p2 = scmp.ne.s32.totalorder %s1192_s19, %s1817_s24  ;;  %s1821_s16 = sshll.u32 %s1923_s25, 4  ;;  %s1822_s16 = int_to_ptr.vmem [resolvable:$false] %s1821_s16 }
 0x3f8   : > { %s1823_s0 = scalar_lea.vmem %s1822_s16, 128  ;;  %p1824_p6 = scmp.lt.s32.totalorder %s1192_s19, %s1822_s16 }
 0x3f9   : > { %p1819_p11 = pnand %p1818_p2, %p2094_p0  ;;  %p1825_p9 = scmp.lt.s32.totalorder %s1823_s0, %s1817_s24 }
 0x3fb   : > { %s1189_s9 = scalar_lea.hbm %s2288_s6, %s1446_s13  ;;  %p1820_p7 = pneg %p1819_p11 }
 0x3fc   : > { %p1826_p13 = por %p1825_p9, %p1824_p6 }
 0x3fe   : > { %p1827_p1 = pnand %p1826_p13, %p1820_p7 }
 0x400   : > { %1830 = shalt.err (!%p1827_p1)
}
 0x401   : > { %s1831_s4 = scalar_lea.hbm %s1189_s9, 64  ;;  %s1835_s14 = scalar_lea.hbm %s2288_s6, 128 }
 0x402   : > { %p1832_p4 = scmp.ne.s32.totalorder %s1189_s9, %s1831_s4  ;;  %p1836_p5 = scmp.lt.s32.totalorder %s1189_s9, %s2288_s6 }
 0x403   : > { %p1837_p3 = scmp.lt.s32.totalorder %s1835_s14, %s1831_s4 }
 0x404   : > { %p1833_p8 = pnand %p1832_p4, %p2094_p0 }
 0x405   : > { %p1838_p10 = por %p1837_p3, %p1836_p5 }
 0x406   : > { %p1834_p12 = pneg %p1833_p8 }
 0x408   : > { %p1839_p2 = pnand %p1838_p10, %p1834_p12 }
 0x40a   : > { %1842 = shalt.err (!%p1839_p2)
}
 0x40b   : > { %1525 = dma.vmem_to_hbm [thread:$0]  (%p2094_p0), %s1192_s19, 64, %s1189_s9, %s1154_s20   ;;  %vm1146_vm2 = vcmask 7168  }
 0x40c   : > { %p541_p11 = scmp.lt.s32.totalorder %s1901_s28, 1  ;;  %s2289_s24 = sld [smem:[#allocation27_spill]] }
 0x40e   : > { %s2303_s28 = smov (!%p541_p11, %s1901_s28), 1 }
 0x40f   : > { %s1385_s0 = sshll.u32 %s2303_s28, 3 }
 0x412   : > { %s547_s25 = scalar_lea.vmem %s2289_s24, %s1385_s0 }
 0x46e   : > { %v1133_v49 = vpop.xlane.xlu1 %1132 }
 0x46f   : > { %1683 = vrcp.f32 %v1133_v49 }
 0x470   : > { %v1144_v51 = vpop.xlane.xlu0 %1143 }
 0x47c   : > { %v1684_v50 = vpop.eup %1683 }
 0x47d   : > { %v1145_v52 = vmul.f32 %v1684_v50, %v1144_v51 }
 0x47f   : > { %1147 = vst.msk [vmem:[%s547_s25] sm:$0xff] %vm1146_vm2, %v1145_v52 }
 0x480 PF: > { %s2290_s16 = sld [smem:[#allocation18_spill]]  ;;  %p2293_p7 = scmp.ge.s32.totalorder %s1909_s30, 2 }
 0x481   : > { %s2291_s15 = sld [smem:[#allocation19_spill]] }
 0x486   : > { %s1206_s4 = sand.u32 1, %s2290_s16  }
 0x487   : > { %p2292_p0 = scmp.ne.s32.totalorder %s2291_s15, 0  ;;  %s1207_s19 = scalar_lea.sflag [#allocation4], %s1206_s4 }
 0x489   : > { %p1543_p6 = pnand %p2293_p7, %p2292_p0 }
 0x48b   : > { %p1544_p9 = pneg %p1543_p6 }
 0x48d   : > { %1880 = dma.done.wait (%p1544_p9), %s1207_s19, 256  }
 0x48e   : > { %1882 = vsyncadd (%p1544_p9), %s1207_s19, 4294967040  ;;  %s1216_s28 = scalar_lea.sflag [#allocation12], %s1206_s4 }
 0x48f   : > { %1884 = dma.done.wait (%p1544_p9), %s1216_s28, 64  }
 0x490   : > { %1886 = vsyncadd (%p1544_p9), %s1216_s28, 4294967232  ;;  %s35_s30 = sadd.s32 1, %s1909_s30   ;;  %s2294_s9 = sld [smem:[#allocation20_spill]] }
 0x491   : > { %p32_p13 = scmp.ge.s32.totalorder %s35_s30, 4   ;;  %s2295_s25 = smov %s1893_s26 }
 0x492   : > { %s2296_s26 = smov %s1897_s27  ;;  %s2297_s27 = smov %s2106_s12 }
 0x493   : > { %s2298_s28 = smov %s1905_s29  ;;  %34 = sbr.rel (!%p32_p13) target bundleno = 18 (0x12), region = 150 }
 0x496   : > { %s2299_s29 = smov %s2294_s9 }
 0x498   :  { %1231 = vsyncpa [#allocation3], 1 }
 0x499   :  { %1233 = vsyncpa [#allocation3 + $0x1], 1 }
 0x49a   :  { %1234 = vsyncpa [#allocation6], 1 }
 0x49b   :  { %1235 = vsyncpa [#allocation9], 1 }
 0x49c   :  { %1236 = vsyncpa [#allocation4], 1 }
 0x49d   :  { %1238 = vsyncpa [#allocation4 + $0x1], 1 }
 0x49e   :  { %1239 = vsyncpa [#allocation12], 1 }
 0x49f   :  { %1241 = vsyncpa [#allocation12 + $0x1], 1 }

</bundles_post_ra>
